<compile_context>
chip_gen: v7x
topology: tpu7x:2x2x1
jax: 0.10.0
libtpu: 0.0.40
codegen_flags: <defaults>
</compile_context>

<pallas_src>
import math

import jax
import jax.numpy as jnp
from jax.experimental import pallas as pl
from jax.experimental.pallas import tpu as pltpu


def _round_up(x, m):
    return (x + m - 1) // m * m


def _cdiv(a, b):
    return (a + b - 1) // b


def _vmem_capacity_bytes():
    """Physical per-core VMEM (v5e/v6e: 128 MiB, v7x: 64 MiB)."""
    try:
        return int(pltpu.get_tpu_info().vmem_capacity_bytes)
    except Exception:  # pragma: no cover - conservative default (v7x per-TC)
        return 64 << 20


def _make_kernels(cd):
    """Build the two kernel variants, closed over the compute dtype."""

    def ffn_kernel_f32out(x_ref, w1_ref, b1_ref, w2_ref, b2_ref, o_ref):
        """Accumulate straight into the resident f32 output block."""
        k = pl.program_id(1)
        h = jnp.dot(x_ref[...].astype(cd), w1_ref[...],
                    preferred_element_type=jnp.float32)
        h = jnp.maximum(h + b1_ref[...], 0.0).astype(cd)
        # TODO(synk): training-mode dropout mask (p=0.3) would be applied to
        # `h` here via pltpu.prng_seed + pltpu.prng_random_bits.
        partial = jnp.dot(h, w2_ref[...], preferred_element_type=jnp.float32)

        @pl.when(k == 0)
        def _():
            o_ref[...] = partial

        @pl.when(k != 0)
        def _():
            o_ref[...] += partial

        @pl.when(k == pl.num_programs(1) - 1)
        def _():
            o_ref[...] += b2_ref[...]

    def ffn_kernel_acc(x_ref, w1_ref, b1_ref, w2_ref, b2_ref, o_ref, acc_ref):
        """f32 scratch accumulator for narrow output dtypes."""
        k = pl.program_id(1)
        h = jnp.dot(x_ref[...].astype(cd), w1_ref[...],
                    preferred_element_type=jnp.float32)
        h = jnp.maximum(h + b1_ref[...], 0.0).astype(cd)
        # TODO(synk): training-mode dropout mask (p=0.3) here.
        partial = jnp.dot(h, w2_ref[...], preferred_element_type=jnp.float32)

        @pl.when(k == 0)
        def _():
            acc_ref[...] = partial

        @pl.when(k != 0)
        def _():
            acc_ref[...] += partial

        @pl.when(k == pl.num_programs(1) - 1)
        def _():
            o_ref[...] = (acc_ref[...] + b2_ref[...]).astype(o_ref.dtype)

    return ffn_kernel_f32out, ffn_kernel_acc


def _choose_tiles(n_rows, d_model_p, d_ff_p, x_itemsize, cb, ob, out_is_f32,
                  vmem_cap):
    """Pick (tm, tk, k_tiles) so the working set fits the real VMEM budget."""
    budget = int(vmem_cap * 0.70)

    def footprint(tm, tk, w_nbuf):
        f = 2 * tm * d_model_p * x_itemsize        # x tile (double-buffered)
        f += 2 * tm * d_model_p * ob               # out tile (double-buffered)
        f += w_nbuf * 2 * d_model_p * tk * cb      # W1 + W2 tiles
        f += w_nbuf * 8 * (tk + d_model_p) * 4     # biases (sublane-padded f32)
        f += tm * tk * (4 + cb)                    # relu intermediate (f32+cast)
        if not out_is_f32:
            f += tm * d_model_p * 4                # separate f32 accumulator
        return f

    # Row tile target: large, but at least 2 row tiles when rows allow so the
    # "parallel" row axis can feed both TensorCores on v7x. On 1-TC chips the
    # extra grid step costs ~0.35 us -- negligible.
    if n_rows >= 16:
        tm_target = min(1024, _round_up(_cdiv(n_rows, 2), 8))
    else:
        tm_target = _round_up(max(n_rows, 1), 8)

    tm_cands = sorted(
        {tm_target} | {c for c in (1024, 768, 512, 384, 256, 128, 64, 32, 16, 8)
                       if c <= tm_target},
        reverse=True)

    # 1) Prefer k_tiles == 1: whole d_ff resident, weights leave HBM once.
    #    (Budget with double-buffered weights so the non-Buffered(1) fallback
    #    also fits.)
    for tm in tm_cands:
        if tm < min(tm_target, 256):
            break                     # don't shrink rows forever just for k=1
        fp = footprint(tm, d_ff_p, 2)
        if fp <= budget:
            return tm, d_ff_p, 1, fp

    # 2) Otherwise tile d_ff; keep the row tile as big as possible since the
    #    weights are re-streamed once per row tile.
    n128 = d_ff_p // 128
    for tm in tm_cands:
        for k_tiles in range(2, n128 + 1):
            if n128 % k_tiles:
                continue
            tk = d_ff_p // k_tiles
            fp = footprint(tm, tk, 2)
            if fp <= budget:
                return tm, tk, k_tiles, fp

    # 3) Last resort: smallest tiles.
    return 8, 128, max(n128, 1), footprint(8, 128, 2)


def prepare_ffn_params(w1, b1, w2, b2, compute_dtype=jnp.bfloat16):
    """One-time weight prep (pad to lane-dense shapes + cast). Do NOT call per step."""
    d_model, d_ff = w1.shape
    assert w2.shape == (d_ff, d_model)
    assert b1.shape == (d_ff,) and b2.shape == (d_model,)
    cd = jnp.dtype(compute_dtype)

    d_model_p = _round_up(d_model, 128)
    d_ff_p = _round_up(d_ff, 128)

    w1p = jnp.pad(w1.astype(cd),
                  ((0, d_model_p - d_model), (0, d_ff_p - d_ff)))
    w2p = jnp.pad(w2.astype(cd),
                  ((0, d_ff_p - d_ff), (0, d_model_p - d_model)))
    b1p = jnp.pad(b1.astype(jnp.float32), (0, d_ff_p - d_ff)).reshape(1, d_ff_p)
    b2p = jnp.pad(b2.astype(jnp.float32),
                  (0, d_model_p - d_model)).reshape(1, d_model_p)

    return dict(w1=w1p, b1=b1p, w2=w2p, b2=b2p,
                d_model=d_model, d_ff=d_ff,
                d_model_p=d_model_p, d_ff_p=d_ff_p,
                compute_dtype=cd)


def positionwise_ffn(x, params):
    """x: (batch, seq, d_model) -> (batch, seq, d_model)."""
    batch, seq, d_model = x.shape
    assert d_model == params["d_model"]
    cd = params["compute_dtype"]
    d_model_p = params["d_model_p"]
    d_ff_p = params["d_ff_p"]

    out_dtype = x.dtype
    out_is_f32 = jnp.dtype(out_dtype) == jnp.dtype(jnp.float32)
    x_itemsize = jnp.dtype(x.dtype).itemsize
    cb = cd.itemsize
    ob = jnp.dtype(out_dtype).itemsize

    n_rows = batch * seq
    vmem_cap = _vmem_capacity_bytes()
    tm, tk, k_tiles, fp = _choose_tiles(
        n_rows, d_model_p, d_ff_p, x_itemsize, cb, ob, out_is_f32, vmem_cap)
    row_tiles = _cdiv(n_rows, tm)
    rows_p = row_tiles * tm

    # ---- activations: keep original dtype (cast in-kernel), pad only if needed
    x2d = x.reshape(n_rows, d_model)
    needs_pad = (rows_p != n_rows) or (d_model_p != d_model)
    if needs_pad:
        x2d = jnp.pad(x2d, ((0, rows_p - n_rows), (0, d_model_p - d_model)))

    # ---- advisory cost estimate (reflects actual weight traffic) ----------
    w_passes = 1 if k_tiles == 1 else row_tiles
    flops = 4 * rows_p * d_model_p * d_ff_p                    # two matmuls
    bytes_accessed = (rows_p * d_model_p * x_itemsize
                      + w_passes * 2 * d_model_p * d_ff_p * cb
                      + w_passes * (d_ff_p + d_model_p) * 4
                      + rows_p * d_model_p * ob)
    cost = pl.CostEstimate(flops=int(flops), transcendentals=0,
                           bytes_accessed=int(bytes_accessed))

    # ---- VMEM limit: generous for the working set, capped at physical -----
    vmem_limit = max(int(fp * 1.4) + (8 << 20), 32 << 20)
    vmem_limit = min(vmem_limit, vmem_cap - (2 << 20))
    vmem_limit = max(vmem_limit, 16 << 20)

    kernel_f32, kernel_acc = _make_kernels(cd)
    if out_is_f32:
        kernel = kernel_f32
        scratch = []
    else:
        kernel = kernel_acc
        scratch = [pltpu.VMEM((tm, d_model_p), jnp.float32)]

    out_shape = jax.ShapeDtypeStruct((rows_p, d_model_p), out_dtype)

    def run(single_buffer_weights):
        wk = ({"pipeline_mode": pl.Buffered(1)}
              if single_buffer_weights else {})
        in_specs = [
            pl.BlockSpec((tm, d_model_p), lambda i, k: (i, 0)),          # x
            pl.BlockSpec((d_model_p, tk), lambda i, k: (0, k), **wk),    # W1
            pl.BlockSpec((1, tk), lambda i, k: (0, k), **wk),            # b1
            pl.BlockSpec((tk, d_model_p), lambda i, k: (k, 0), **wk),    # W2
            pl.BlockSpec((1, d_model_p), lambda i, k: (0, 0), **wk),     # b2
        ]
        out_specs = pl.BlockSpec((tm, d_model_p), lambda i, k: (i, 0))
        fn = pl.pallas_call(
            kernel,
            out_shape=out_shape,
            grid_spec=pltpu.PrefetchScalarGridSpec(
                num_scalar_prefetch=0,
                grid=(row_tiles, k_tiles),
                in_specs=in_specs,
                out_specs=out_specs,
                scratch_shapes=scratch,
            ),
            compiler_params=pltpu.CompilerParams(
                dimension_semantics=("parallel", "arbitrary"),
                vmem_limit_bytes=int(vmem_limit),
            ),
            cost_estimate=cost,
        )
        return fn(x2d, params["w1"], params["b1"], params["w2"], params["b2"])

    if k_tiles == 1:
        # Grid-invariant weights: single-buffer them. If this jax build rejects
        # pipeline_mode, fall back to default buffering -- but never mask a
        # genuine VMEM / resource-exhaustion error.
        try:
            out2d = run(True)
        except Exception as e:  # pragma: no cover - portability fallback
            msg = str(e).lower()
            if ("vmem" in msg or "memory" in msg or "exceed" in msg
                    or "exhaust" in msg):
                raise
            out2d = run(False)
    else:
        out2d = run(False)

    if needs_pad:
        out2d = out2d[:n_rows, :d_model]
    return out2d.reshape(batch, seq, d_model)


def init_params(key, d_model, d_ff):
    """Deterministic init matching nn.Linear's uniform(-1/sqrt(fan_in), +)."""
    k1, k2, k3, k4 = jax.random.split(key, 4)
    bound1 = 1.0 / math.sqrt(d_model)
    bound2 = 1.0 / math.sqrt(d_ff)
    # Stored transposed relative to torch's (out, in) layout: (in, out).
    w1 = jax.random.uniform(k1, (d_model, d_ff), jnp.float32, -bound1, bound1)
    b1 = jax.random.uniform(k2, (d_ff,), jnp.float32, -bound1, bound1)
    w2 = jax.random.uniform(k3, (d_ff, d_model), jnp.float32, -bound2, bound2)
    b2 = jax.random.uniform(k4, (d_model,), jnp.float32, -bound2, bound2)
    return w1, b1, w2, b2


if __name__ == "__main__":
    key = jax.random.PRNGKey(0)
    kx, kp = jax.random.split(key)

    batch, seq, d_model, d_ff = 2, 8, 32, 64
    x = jax.random.normal(kx, (batch, seq, d_model), jnp.float32)
    w1, b1, w2, b2 = init_params(kp, d_model, d_ff)

    params = prepare_ffn_params(w1, b1, w2, b2)            # one-time weight prep
    out = jax.block_until_ready(positionwise_ffn(x, params))
    assert out.shape == (batch, seq, d_model)

    f32 = jnp.float32
    # Reference matching the kernel's numerics (bf16 operands, f32 accumulate).
    xb = x.astype(jnp.bfloat16).astype(f32)
    w1b = w1.astype(jnp.bfloat16).astype(f32)
    w2b = w2.astype(jnp.bfloat16).astype(f32)
    h = jnp.maximum(xb @ w1b + b1, 0.0).astype(jnp.bfloat16).astype(f32)
    ref_q = h @ w2b + b2
    err_q = float(jnp.max(jnp.abs(out.astype(f32) - ref_q)))
    assert jnp.allclose(out.astype(f32), ref_q, atol=2e-2, rtol=2e-2), err_q

    # Loose sanity check against the pure-f32 math of the PyTorch module.
    ref_f32 = jnp.maximum(x @ w1 + b1, 0.0) @ w2 + b2
    assert jnp.allclose(out.astype(f32), ref_f32, atol=5e-2, rtol=5e-2)

    print("KERNEL_OK")
</pallas_src>

<mosaic_0001>
module attributes {stable_mosaic.version = 11 : i64} {
  func.func @ffn_kernel_f32out(%arg0: i32, %arg1: i32, %arg2: memref<8x128xf32, #tpu.memory_space<vmem>>, %arg3: memref<128x128xbf16, #tpu.memory_space<vmem>>, %arg4: memref<1x128xf32, #tpu.memory_space<vmem>>, %arg5: memref<128x128xbf16, #tpu.memory_space<vmem>>, %arg6: memref<1x128xf32, #tpu.memory_space<vmem>>, %arg7: memref<8x128xf32, #tpu.memory_space<vmem>>) attributes {dimension_semantics = [#tpu.dimension_semantics<parallel>, #tpu.dimension_semantics<arbitrary>], iteration_bounds = array<i64: 2, 1>, scalar_prefetch = 0 : i64, scratch_operands = 0 : i64, tpu.core_type = #tpu.core_type<tc>, window_params = [{transform_indices = @transform_0, window_bounds = array<i64: 8, 128>}, {pipeline_mode = #tpu.pipeline_mode<synchronous>, transform_indices = @transform_1, window_bounds = array<i64: 128, 128>}, {pipeline_mode = #tpu.pipeline_mode<synchronous>, transform_indices = @transform_2, window_bounds = array<i64: 1, 128>}, {pipeline_mode = #tpu.pipeline_mode<synchronous>, transform_indices = @transform_3, window_bounds = array<i64: 128, 128>}, {pipeline_mode = #tpu.pipeline_mode<synchronous>, transform_indices = @transform_4, window_bounds = array<i64: 1, 128>}, {transform_indices = @transform_5, window_bounds = array<i64: 8, 128>}]} {
    %c0 = arith.constant 0 : index
    %c0_0 = arith.constant 0 : index
    %0 = vector.load %arg2[%c0, %c0_0] : memref<8x128xf32, #tpu.memory_space<vmem>>, vector<8x128xf32>
    %1 = arith.truncf %0 : vector<8x128xf32> to vector<8x128xbf16>
    %c0_1 = arith.constant 0 : index
    %c0_2 = arith.constant 0 : index
    %2 = vector.load %arg3[%c0_1, %c0_2] : memref<128x128xbf16, #tpu.memory_space<vmem>>, vector<128x128xbf16>
    %cst = arith.constant dense<0.000000e+00> : vector<8x128xf32>
    %3 = tpu.matmul %1, %2, %cst {dimension_numbers = #tpu.dot_dimension_numbers<[1], [0], [0], [1], [0, 0, 1, 1], [], []>} : vector<8x128xbf16>, vector<128x128xbf16>, vector<8x128xf32> -> vector<8x128xf32>
    %c0_3 = arith.constant 0 : index
    %c0_4 = arith.constant 0 : index
    %4 = vector.load %arg4[%c0_3, %c0_4] : memref<1x128xf32, #tpu.memory_space<vmem>>, vector<1x128xf32>
    %5 = vector.broadcast %4 : vector<1x128xf32> to vector<8x128xf32>
    %6 = arith.addf %3, %5 : vector<8x128xf32>
    %cst_5 = arith.constant 0.000000e+00 : f32
    %7 = vector.broadcast %cst_5 : f32 to vector<8x128xf32>
    %8 = arith.maximumf %6, %7 : vector<8x128xf32>
    %9 = arith.truncf %8 : vector<8x128xf32> to vector<8x128xbf16>
    %c0_6 = arith.constant 0 : index
    %c0_7 = arith.constant 0 : index
    %10 = vector.load %arg5[%c0_6, %c0_7] : memref<128x128xbf16, #tpu.memory_space<vmem>>, vector<128x128xbf16>
    %cst_8 = arith.constant dense<0.000000e+00> : vector<8x128xf32>
    %11 = tpu.matmul %9, %10, %cst_8 {dimension_numbers = #tpu.dot_dimension_numbers<[1], [0], [0], [1], [0, 0, 1, 1], [], []>} : vector<8x128xbf16>, vector<128x128xbf16>, vector<8x128xf32> -> vector<8x128xf32>
    %c0_i32 = arith.constant 0 : i32
    %12 = arith.cmpi eq, %arg1, %c0_i32 : i32
    %13 = arith.extui %12 : i1 to i32
    %c0_i32_9 = arith.constant 0 : i32
    %14 = arith.cmpi ne, %13, %c0_i32_9 : i32
    scf.if %14 {
      %c0_14 = arith.constant 0 : index
      %c0_15 = arith.constant 0 : index
      %21 = vector.load %arg7[%c0_14, %c0_15] : memref<8x128xf32, #tpu.memory_space<vmem>>, vector<8x128xf32>
      tpu.vector_store %arg7[%c0_14, %c0_15], %11 {strides = array<i32>} : memref<8x128xf32, #tpu.memory_space<vmem>>, vector<8x128xf32>,
    } else {
    }
    %c0_i32_10 = arith.constant 0 : i32
    %15 = arith.cmpi ne, %arg1, %c0_i32_10 : i32
    %16 = arith.extui %15 : i1 to i32
    %c0_i32_11 = arith.constant 0 : i32
    %17 = arith.cmpi ne, %16, %c0_i32_11 : i32
    scf.if %17 {
      %c0_14 = arith.constant 0 : index
      %c0_15 = arith.constant 0 : index
      %21 = vector.load %arg7[%c0_14, %c0_15] : memref<8x128xf32, #tpu.memory_space<vmem>>, vector<8x128xf32>
      %22 = arith.addf %21, %11 : vector<8x128xf32>
      %c0_16 = arith.constant 0 : index
      %c0_17 = arith.constant 0 : index
      %23 = vector.load %arg7[%c0_16, %c0_17] : memref<8x128xf32, #tpu.memory_space<vmem>>, vector<8x128xf32>
      tpu.vector_store %arg7[%c0_16, %c0_17], %22 {strides = array<i32>} : memref<8x128xf32, #tpu.memory_space<vmem>>, vector<8x128xf32>,
    } else {
    }
    %c0_i32_12 = arith.constant 0 : i32
    %18 = arith.cmpi eq, %arg1, %c0_i32_12 : i32
    %19 = arith.extui %18 : i1 to i32
    %c0_i32_13 = arith.constant 0 : i32
    %20 = arith.cmpi ne, %19, %c0_i32_13 : i32
    scf.if %20 {
      %c0_14 = arith.constant 0 : index
      %c0_15 = arith.constant 0 : index
      %21 = vector.load %arg7[%c0_14, %c0_15] : memref<8x128xf32, #tpu.memory_space<vmem>>, vector<8x128xf32>
      %c0_16 = arith.constant 0 : index
      %c0_17 = arith.constant 0 : index
      %22 = vector.load %arg6[%c0_16, %c0_17] : memref<1x128xf32, #tpu.memory_space<vmem>>, vector<1x128xf32>
      %23 = vector.broadcast %22 : vector<1x128xf32> to vector<8x128xf32>
      %24 = arith.addf %21, %23 : vector<8x128xf32>
      %c0_18 = arith.constant 0 : index
      %c0_19 = arith.constant 0 : index
      %25 = vector.load %arg7[%c0_18, %c0_19] : memref<8x128xf32, #tpu.memory_space<vmem>>, vector<8x128xf32>
      tpu.vector_store %arg7[%c0_18, %c0_19], %24 {strides = array<i32>} : memref<8x128xf32, #tpu.memory_space<vmem>>, vector<8x128xf32>,
    } else {
    }
    return
  }
  func.func @transform_0(%arg0: i32, %arg1: i32) -> (i32, i32) {
    %c0_i32 = arith.constant 0 : i32
    %c0_i32_0 = arith.constant 0 : i32
    return %arg0, %c0_i32 : i32, i32
  }
  func.func @transform_1(%arg0: i32, %arg1: i32) -> (i32, i32) {
    %c0_i32 = arith.constant 0 : i32
    %c0_i32_0 = arith.constant 0 : i32
    return %c0_i32, %arg1 : i32, i32
  }
  func.func @transform_2(%arg0: i32, %arg1: i32) -> (i32, i32) {
    %c0_i32 = arith.constant 0 : i32
    %c0_i32_0 = arith.constant 0 : i32
    return %c0_i32, %arg1 : i32, i32
  }
  func.func @transform_3(%arg0: i32, %arg1: i32) -> (i32, i32) {
    %c0_i32 = arith.constant 0 : i32
    %c0_i32_0 = arith.constant 0 : i32
    return %arg1, %c0_i32 : i32, i32
  }
  func.func @transform_4(%arg0: i32, %arg1: i32) -> (i32, i32) {
    %c0_i32 = arith.constant 0 : i32
    %c0_i32_0 = arith.constant 0 : i32
    %c0_i32_1 = arith.constant 0 : i32
    return %c0_i32, %c0_i32_0 : i32, i32
  }
  func.func @transform_5(%arg0: i32, %arg1: i32) -> (i32, i32) {
    %c0_i32 = arith.constant 0 : i32
    %c0_i32_0 = arith.constant 0 : i32
    return %arg0, %c0_i32 : i32, i32
  }
}

module attributes {stable_mosaic.version = 11 : i64} {
  func.func @ffn_kernel_f32out(%arg0: i32, %arg1: i32, %arg2: memref<8x128xf32, #tpu.memory_space<vmem>>, %arg3: memref<128x128xbf16, #tpu.memory_space<vmem>>, %arg4: memref<1x128xf32, #tpu.memory_space<vmem>>, %arg5: memref<128x128xbf16, #tpu.memory_space<vmem>>, %arg6: memref<1x128xf32, #tpu.memory_space<vmem>>, %arg7: memref<8x128xf32, #tpu.memory_space<vmem>>) attributes {dimension_semantics = [#tpu.dimension_semantics<parallel>, #tpu.dimension_semantics<arbitrary>], iteration_bounds = array<i64: 2, 1>, scalar_prefetch = 0 : i64, scratch_operands = 0 : i64, tpu.core_type = #tpu.core_type<tc>, window_params = [{transform_indices = @transform_0, window_bounds = array<i64: 8, 128>}, {transform_indices = @transform_1, window_bounds = array<i64: 128, 128>}, {transform_indices = @transform_2, window_bounds = array<i64: 1, 128>}, {transform_indices = @transform_3, window_bounds = array<i64: 128, 128>}, {pipeline_mode = #tpu.pipeline_mode<synchronous>, transform_indices = @transform_4, window_bounds = array<i64: 1, 128>}, {transform_indices = @transform_5, window_bounds = array<i64: 8, 128>}]} {
    %c0 = arith.constant 0 : index
    %c0_0 = arith.constant 0 : index
    %0 = vector.load %arg2[%c0, %c0_0] : memref<8x128xf32, #tpu.memory_space<vmem>>, vector<8x128xf32>
    %1 = arith.truncf %0 : vector<8x128xf32> to vector<8x128xbf16>
    %c0_1 = arith.constant 0 : index
    %c0_2 = arith.constant 0 : index
    %2 = vector.load %arg3[%c0_1, %c0_2] : memref<128x128xbf16, #tpu.memory_space<vmem>>, vector<128x128xbf16>
    %cst = arith.constant dense<0.000000e+00> : vector<8x128xf32>
    %3 = tpu.matmul %1, %2, %cst {dimension_numbers = #tpu.dot_dimension_numbers<[1], [0], [0], [1], [0, 0, 1, 1], [], []>} : vector<8x128xbf16>, vector<128x128xbf16>, vector<8x128xf32> -> vector<8x128xf32>
    %c0_3 = arith.constant 0 : index
    %c0_4 = arith.constant 0 : index
    %4 = vector.load %arg4[%c0_3, %c0_4] : memref<1x128xf32, #tpu.memory_space<vmem>>, vector<1x128xf32>
    %5 = vector.broadcast %4 : vector<1x128xf32> to vector<8x128xf32>
    %6 = arith.addf %3, %5 : vector<8x128xf32>
    %cst_5 = arith.constant 0.000000e+00 : f32
    %7 = vector.broadcast %cst_5 : f32 to vector<8x128xf32>
    %8 = arith.maximumf %6, %7 : vector<8x128xf32>
    %9 = arith.truncf %8 : vector<8x128xf32> to vector<8x128xbf16>
    %c0_6 = arith.constant 0 : index
    %c0_7 = arith.constant 0 : index
    %10 = vector.load %arg5[%c0_6, %c0_7] : memref<128x128xbf16, #tpu.memory_space<vmem>>, vector<128x128xbf16>
    %cst_8 = arith.constant dense<0.000000e+00> : vector<8x128xf32>
    %11 = tpu.matmul %9, %10, %cst_8 {dimension_numbers = #tpu.dot_dimension_numbers<[1], [0], [0], [1], [0, 0, 1, 1], [], []>} : vector<8x128xbf16>, vector<128x128xbf16>, vector<8x128xf32> -> vector<8x128xf32>
    %c0_i32 = arith.constant 0 : i32
    %12 = arith.cmpi eq, %arg1, %c0_i32 : i32
    %13 = arith.extui %12 : i1 to i32
    %c0_i32_9 = arith.constant 0 : i32
    %14 = arith.cmpi ne, %13, %c0_i32_9 : i32
    scf.if %14 {
      %c0_14 = arith.constant 0 : index
      %c0_15 = arith.constant 0 : index
      %21 = vector.load %arg7[%c0_14, %c0_15] : memref<8x128xf32, #tpu.memory_space<vmem>>, vector<8x128xf32>
      tpu.vector_store %arg7[%c0_14, %c0_15], %11 {strides = array<i32>} : memref<8x128xf32, #tpu.memory_space<vmem>>, vector<8x128xf32>,
    } else {
    }
    %c0_i32_10 = arith.constant 0 : i32
    %15 = arith.cmpi ne, %arg1, %c0_i32_10 : i32
    %16 = arith.extui %15 : i1 to i32
    %c0_i32_11 = arith.constant 0 : i32
    %17 = arith.cmpi ne, %16, %c0_i32_11 : i32
    scf.if %17 {
      %c0_14 = arith.constant 0 : index
      %c0_15 = arith.constant 0 : index
      %21 = vector.load %arg7[%c0_14, %c0_15] : memref<8x128xf32, #tpu.memory_space<vmem>>, vector<8x128xf32>
      %22 = arith.addf %21, %11 : vector<8x128xf32>
      %c0_16 = arith.constant 0 : index
      %c0_17 = arith.constant 0 : index
      %23 = vector.load %arg7[%c0_16, %c0_17] : memref<8x128xf32, #tpu.memory_space<vmem>>, vector<8x128xf32>
      tpu.vector_store %arg7[%c0_16, %c0_17], %22 {strides = array<i32>} : memref<8x128xf32, #tpu.memory_space<vmem>>, vector<8x128xf32>,
    } else {
    }
    %c0_i32_12 = arith.constant 0 : i32
    %18 = arith.cmpi eq, %arg1, %c0_i32_12 : i32
    %19 = arith.extui %18 : i1 to i32
    %c0_i32_13 = arith.constant 0 : i32
    %20 = arith.cmpi ne, %19, %c0_i32_13 : i32
    scf.if %20 {
      %c0_14 = arith.constant 0 : index
      %c0_15 = arith.constant 0 : index
      %21 = vector.load %arg7[%c0_14, %c0_15] : memref<8x128xf32, #tpu.memory_space<vmem>>, vector<8x128xf32>
      %c0_16 = arith.constant 0 : index
      %c0_17 = arith.constant 0 : index
      %22 = vector.load %arg6[%c0_16, %c0_17] : memref<1x128xf32, #tpu.memory_space<vmem>>, vector<1x128xf32>
      %23 = vector.broadcast %22 : vector<1x128xf32> to vector<8x128xf32>
      %24 = arith.addf %21, %23 : vector<8x128xf32>
      %c0_18 = arith.constant 0 : index
      %c0_19 = arith.constant 0 : index
      %25 = vector.load %arg7[%c0_18, %c0_19] : memref<8x128xf32, #tpu.memory_space<vmem>>, vector<8x128xf32>
      tpu.vector_store %arg7[%c0_18, %c0_19], %24 {strides = array<i32>} : memref<8x128xf32, #tpu.memory_space<vmem>>, vector<8x128xf32>,
    } else {
    }
    return
  }
  func.func @transform_0(%arg0: i32, %arg1: i32) -> (i32, i32) {
    %c0_i32 = arith.constant 0 : i32
    %c0_i32_0 = arith.constant 0 : i32
    return %arg0, %c0_i32 : i32, i32
  }
  func.func @transform_1(%arg0: i32, %arg1: i32) -> (i32, i32) {
    %c0_i32 = arith.constant 0 : i32
    %c0_i32_0 = arith.constant 0 : i32
    return %c0_i32, %arg1 : i32, i32
  }
  func.func @transform_2(%arg0: i32, %arg1: i32) -> (i32, i32) {
    %c0_i32 = arith.constant 0 : i32
    %c0_i32_0 = arith.constant 0 : i32
    return %c0_i32, %arg1 : i32, i32
  }
  func.func @transform_3(%arg0: i32, %arg1: i32) -> (i32, i32) {
    %c0_i32 = arith.constant 0 : i32
    %c0_i32_0 = arith.constant 0 : i32
    return %arg1, %c0_i32 : i32, i32
  }
  func.func @transform_4(%arg0: i32, %arg1: i32) -> (i32, i32) {
    %c0_i32 = arith.constant 0 : i32
    %c0_i32_0 = arith.constant 0 : i32
    %c0_i32_1 = arith.constant 0 : i32
    return %c0_i32, %c0_i32_0 : i32, i32
  }
  func.func @transform_5(%arg0: i32, %arg1: i32) -> (i32, i32) {
    %c0_i32 = arith.constant 0 : i32
    %c0_i32_0 = arith.constant 0 : i32
    return %arg0, %c0_i32 : i32, i32
  }
}

</mosaic_0001>

<bundles_post_ra>
// kernel: tpu_custom_call.1
= control target key start
LH: loop header
LB: loop body
LE: loop exit
PB: predicated region body
PF: predicated region fallthrough
CT: control target
= control target key end

     0   :  { %10 = vsyncpa [#allocation3], 0  ;;  %s1355_s0 = inlined_call_operand.hbm [shape: f32[16,128], index: 0, kind: input, shape index: {}]   ;;  %s1356_s1 = inlined_call_operand.hbm [shape: bf16[128,128], index: 1, kind: input, shape index: {}]   ;;  %s1357_s2 = inlined_call_operand.vmem [shape: f32[1,128], index: 2, kind: input, shape index: {}]   ;;  %s1358_s3 = inlined_call_operand.hbm [shape: bf16[128,128], index: 3, kind: input, shape index: {}]   ;;  %s1359_s4 = inlined_call_operand.vmem [shape: f32[1,128], index: 4, kind: input, shape index: {}]   ;;  %s1360_s5 = inlined_call_operand.hbm [shape: f32[16,128], index: 5, kind: output, shape index: {}]  }
   0x1   :  { %12 = vsyncpa [#allocation3 + $0x1], 0 }
   0x2   :  { %13 = vsyncpa [#allocation6], 0 }
   0x3   :  { %14 = vsyncpa [#allocation4], 0 }
   0x4   :  { %16 = vsyncpa [#allocation4 + $0x1], 0  ;;  %s1092_s18 = smov 0   ;;  %s1094_s19 = smov 0  }
   0x5   :  { %s1096_s20 = smov 0   ;;  %s1098_s21 = smov 0  }
   0x6   :  { %s1100_s22 = smov 0   ;;  %s1102_s23 = smov 0  }
   0x7 LB: > { %s683_s24 = sadd.s32 4294967295, %s1052_s23   ;;  %s684_s25 = sadd.s32 4294967294, %s1052_s23   ;;  %s1052_s23 = sphi %s1102_s23, %s22_s23   ;;  %s1048_s22 = sphi %s1100_s22, %s1382_s22   ;;  %s1044_s21 = sphi %s1098_s21, %s1381_s21   ;;  %s1040_s20 = sphi %s1096_s20, %s1380_s20   ;;  %s1036_s19 = sphi %s1094_s19, %s1379_s19   ;;  %s1032_s18 = sphi %s1092_s18, %s1378_s18  }
   0x8   : > { %p54_p0 = scmp.ne.s32.totalorder %s1036_s19, %s1032_s18  ;;  %p1126_p1 = scmp.eq.s32.totalorder %s683_s24, 0 }
   0x9   : > { %p1130_p2 = scmp.eq.s32.totalorder %s683_s24, 1  ;;  %p183_p3 = scmp.eq.s32.totalorder %s684_s25, 1 }
   0xa   : > { %s1365_s26 = scalar_select %p1126_p1, 1, 0 }
   0xb   : > { %p1136_p4 = por %p1126_p1, %p54_p0  ;;  %p685_p5 = scmp.ge.s32.totalorder %s1052_s23, 1 }
   0xc   : > { %p1141_p6 = por %p183_p3, %p54_p0  ;;  %p190_p7 = scmp.lt.s32.totalorder %s1052_s23, 3 }
   0xd   : > { %s1367_s28 = scalar_select %p1136_p4, 1, 0 }
   0xe   : > { %s1368_s29 = scalar_select %p1141_p6, 1, 0 }
   0xf   : > { %p1146_p8 = pnand %p685_p5, %p190_p7  ;;  %s1054_s6 = smov [#allocation5]  }
  0x10   : > { %s204_s7 = sshll.u32 %s1054_s6, 4  ;;  %s1055_s9 = smov [#allocation7]   ;;  %s1150_s7 = int_to_ptr.vmem [resolvable:$true] %s204_s7 }
  0x11   : > { %p789_p9 = pneg %p1146_p8  ;;  %s226_s10 = sshll.u32 %s1055_s9, 4  ;;  %s1161_s10 = int_to_ptr.vmem [resolvable:$true] %s226_s10 }
  0x12   : > { %s880_s13 = scalar_lea.hbm %s1356_s1, 1024 }
  0x13   : > { %p1157_p11 = pnand %p789_p9, %p1126_p1  ;;  %p881_p12 = scmp.ne.s32.totalorder %s1356_s1, %s880_s13 }
  0x14   : > { %p887_p5 = scmp.lt.u32.totalorder %s880_s13, %s1356_s1 }
  0x15   : > { %p882_p13 = pneg %p1157_p11 }
  0x17   : > { %p883_p0 = pnand %p882_p13, %p881_p12 }
  0x19   : > { %p884_p3 = pneg %p883_p0 }
  0x1b   : > { %p889_p7 = pnand %p887_p5, %p884_p3 }
  0x1d   : > { %892 = shalt.err (!%p889_p7)
}
  0x1e   : > { %s893_s24 = scalar_lea.vmem %s1150_s7, 1024  ;;  %p901_p1 = scmp.lt.s32.totalorder %s1150_s7, %s1150_s7 }
  0x1f   : > { %p894_p9 = scmp.ne.s32.totalorder %s1150_s7, %s893_s24  ;;  %p902_p12 = scmp.lt.s32.totalorder %s893_s24, %s893_s24 }
  0x21   : > { %p896_p10 = pnand %p894_p9, %p882_p13  ;;  %p903_p0 = por %p902_p12, %p901_p1 }
  0x23   : > { %p897_p6 = pneg %p896_p10 }
  0x25   : > { %p904_p4 = pnand %p903_p0, %p897_p6 }
  0x27   : > { %907 = shalt.err (!%p904_p4)
}
  0x28   : > { %s1056_s25 = smov 64   ;;  %s1057_s6 = smov 4  }
  0x29   : > { %792 = dma.hbm_to_vmem [thread:$0]  (!%p1157_p11), %s1356_s1, 1024, %s1150_s7, [#allocation6], %s1056_s25, %s1056_s25, %s1057_s6  }
  0x2a   : > { %s908_s14 = scalar_lea.hbm %s1358_s3, 1024 }
  0x2b   : > { %p909_p1 = scmp.ne.s32.totalorder %s1358_s3, %s908_s14  ;;  %p915_p10 = scmp.lt.u32.totalorder %s908_s14, %s1358_s3 }
  0x2d   : > { %p911_p4 = pnand %p909_p1, %p882_p13 }
  0x2f   : > { %p912_p6 = pneg %p911_p4 }
  0x31   : > { %p917_p3 = pnand %p915_p10, %p912_p6 }
  0x33   : > { %920 = shalt.err (!%p917_p3)
}
  0x34   : > { %s921_s7 = scalar_lea.vmem %s1161_s10, 1024  ;;  %p929_p12 = scmp.lt.s32.totalorder %s1161_s10, %s1161_s10 }
  0x35   : > { %p922_p5 = scmp.ne.s32.totalorder %s1161_s10, %s921_s7  ;;  %p930_p0 = scmp.lt.s32.totalorder %s921_s7, %s921_s7 }
  0x37   : > { %p924_p7 = pnand %p922_p5, %p882_p13  ;;  %p931_p1 = por %p930_p0, %p929_p12 }
  0x39   : > { %p925_p9 = pneg %p924_p7 }
  0x3b   : > { %p932_p4 = pnand %p931_p1, %p925_p9 }
  0x3d   : > { %935 = shalt.err (!%p932_p4)
}
  0x3e   : > { %795 = dma.hbm_to_vmem [thread:$0]  (!%p1157_p11), %s1358_s3, 1024, %s1161_s10, [#allocation6], %s1056_s25, %s1056_s25, %s1057_s6  }
  0x3f   : > { %s34_s12 = sadd.s32 1, %s1048_s22  ;;  %s41_s13 = sadd.s32 1, %s1040_s20 }
  0x40   : > { %p36_p13 = scmp.ge.s32.totalorder %s34_s12, 2  ;;  %p48_p6 = scmp.ne.s32.totalorder %s1040_s20, %s1036_s19 }
  0x41   : > { %p49_p10 = scmp.eq.s32.totalorder %s1052_s23, 0  ;;  %p806_p3 = scmp.lt.s32.totalorder %s1052_s23, 2 }
  0x42   : > { %s1384_s12 = smov (%p36_p13, %s34_s12), 0  ;;  %p1225_p7 = por %p1130_p2, %p48_p6 }
  0x43   : > { %p50_p5 = por %p49_p10, %p48_p6  ;;  %s38_s14 = ssub.s32 %s1048_s22, %s1384_s12 }
  0x44   : > { %s1371_s8 = scalar_select %p1225_p7, 1, 0 }
  0x45   : > { %s243_s15 = sand.u32 1, %s1040_s20   ;;  %p39_p9 = scmp.eq.s32.totalorder %s38_s14, 0 }
  0x46   : > { %s690_s10 = sshll.u32 %s243_s15, 3  ;;  %s691_s25 = sshll.u32 %s1048_s22, 7 }
  0x47   : > { %s1234_s6 = scalar_select %p39_p9, %s1040_s20, %s41_s13  }
  0x48   : > { %s1239_s24 = scalar_lea.hbm %s1355_s0, %s691_s25  ;;  %s247_s27 = scalar_lea.vmem [#allocation2], %s690_s10 }
  0x49   : > { %s254_s7 = sshll.u32 %s247_s27, 4  ;;  %p1243_p2 = pnand %p806_p3, %p50_p5  ;;  %s1247_s7 = int_to_ptr.vmem [resolvable:$true] %s254_s7 }
  0x4a   : > { %s244_s11 = scalar_lea.sflag [#allocation3], %s243_s15  ;;  %s936_s13 = scalar_lea.hbm %s1239_s24, 128 }
  0x4b   : > { %p937_p11 = scmp.ne.s32.totalorder %s1239_s24, %s936_s13  ;;  %p938_p12 = pneg %p1243_p2 }
  0x4c   : > { %s941_s25 = scalar_lea.hbm %s1355_s0, 256  ;;  %p942_p4 = scmp.lt.u32.totalorder %s1239_s24, %s1355_s0 }
  0x4d   : > { %p939_p0 = pnand %p938_p12, %p937_p11  ;;  %p943_p13 = scmp.lt.u32.totalorder %s941_s25, %s936_s13 }
  0x4e   : > { %p945_p10 = scmp.lt.u32.totalorder %s936_s13, %s1239_s24 }
  0x4f   : > { %p940_p1 = pneg %p939_p0  ;;  %p944_p6 = por %p943_p13, %p942_p4 }
  0x51   : > { %p946_p3 = por %p945_p10, %p944_p6 }
  0x53   : > { %p947_p5 = pnand %p946_p3, %p940_p1 }
  0x55   : > { %950 = shalt.err (!%p947_p5)
}
  0x56   : > { %s951_s15 = scalar_lea.vmem %s1247_s7, 128  ;;  %s1058_s27 = smov [#allocation2]  }
  0x57   : > { %p952_p9 = scmp.ne.s32.totalorder %s1247_s7, %s951_s15  ;;  %s956_s14 = sshll.u32 %s1058_s27, 4  ;;  %s957_s14 = int_to_ptr.vmem [resolvable:$false] %s956_s14 }
  0x58   : > { %s958_s10 = scalar_lea.vmem %s957_s14, 256  ;;  %p959_p7 = scmp.lt.s32.totalorder %s1247_s7, %s957_s14 }
  0x59   : > { %p954_p11 = pnand %p952_p9, %p938_p12  ;;  %p960_p4 = scmp.lt.s32.totalorder %s958_s10, %s951_s15 }
  0x5b   : > { %p955_p0 = pneg %p954_p11  ;;  %p961_p13 = por %p960_p4, %p959_p7 }
  0x5d   : > { %p962_p6 = pnand %p961_p13, %p955_p0 }
  0x5f   : > { %965 = shalt.err (!%p962_p6)
}
  0x60   : > { %799 = dma.hbm_to_vmem [thread:$0]  (!%p1243_p2), %s1239_s24, 128, %s1247_s7, %s244_s11  }
  0x61   : > { %263 = sbr.rel (%p1146_p8) target bundleno = 588 (0x24c), region = 40  ;;  %s1277_s13 = sand.u32 (!%p1146_p8), 1, %s1036_s19  }
  0x62   : > { %s693_s25 = sshll.u32 (!%p1146_p8), %s1277_s13, 3  ;;  %s266_s16 = scalar_lea.sflag (!%p1146_p8), [#allocation3], %s1277_s13 }
  0x63   : > { %s1283_s17 = scalar_lea.vmem (!%p1146_p8), [#allocation2], %s693_s25  ;;  %p1373_p7 = scmp.ne.s32.totalorder (!%p1146_p8), %s1367_s28, 0 }
  0x68   : > { %1019 = dma.done.wait (%p1373_p7), %s266_s16, 128  }
  0x69   : > { %1021 = vsyncadd (%p1373_p7), %s266_s16, 4294967168  ;;  %p1374_p2 = scmp.ne.s32.totalorder %s1365_s26, 0 }
  0x6b   : > { %1023 = dma.done.wait (%p1374_p2), [#allocation6], 2048  }
  0x6c   : > { %1025 = vsyncadd (%p1374_p2), [#allocation6], 4294965248  ;;  %v1059_v0 = vmov 0.0   ;;  %vm1060_vm0 = vmmov 0   ;;  %v864_v1 = vld [vmem:[#allocation5] sm:$0xff]   ;;  %v865_v2 = vld [vmem:[#allocation5 + $0x8] sm:$0xff]  }
  0x6d   : > { %737 = vmatprep.subr.bf16.mxu0 %v1059_v0  ;;  %753 = vmatprep.mubr.msk.bf16.mxu0 %vm1060_vm0, %v1059_v0  ;;  %v866_v3 = vld [vmem:[#allocation5 + $0x10] sm:$0xff]   ;;  %v872_v4 = vld [vmem:[#allocation7] sm:$0xff]   ;;  %v867_v5 = vld [vmem:[#allocation5 + $0x18] sm:$0xff]   ;;  %s716_s7 = sshll.u32 %s1044_s21, 7  ;;  %s306_s9 = scalar_lea.vmem [#allocation8], %s693_s25 }
  0x6e   : > { %757 = vmatprep.subr.bf16.mxu1 %v1059_v0  ;;  %773 = vmatprep.mubr.msk.bf16.mxu1 %vm1060_vm0, %v1059_v0  ;;  %v873_v6 = vld [vmem:[#allocation7 + $0x8] sm:$0xff]   ;;  %v868_v7 = vld [vmem:[#allocation5 + $0x20] sm:$0xff]   ;;  %v874_v8 = vld [vmem:[#allocation7 + $0x10] sm:$0xff]   ;;  %s570_s11 = sshll.u32 %s306_s9, 4  ;;  %s1306_s14 = scalar_lea.hbm %s1360_s5, %s716_s7  ;;  %s1308_s11 = int_to_ptr.vmem [resolvable:$true] %s570_s11 }
  0x6f   : > { %738 = vmatpush3.bf16.msra.mxu0 %v864_v1  ;;  %758 = vmatpush3.bf16.msra.mxu1 %v872_v4  ;;  %v869_v9 = vld [vmem:[#allocation5 + $0x28] sm:$0xff]   ;;  %v875_v10 = vld [vmem:[#allocation7 + $0x18] sm:$0xff]   ;;  %v870_v11 = vld [vmem:[#allocation5 + $0x30] sm:$0xff]   ;;  %s557_s21 = scalar_lea.sflag [#allocation4], %s1277_s13  ;;  %s966_s10 = scalar_lea.vmem %s1308_s11, 128 }
  0x70   : > { %739 = vmatprep.subr.bf16.mxu0 %v1059_v0  ;;  %759 = vmatprep.subr.bf16.mxu1 %v1059_v0  ;;  %v876_v12 = vld [vmem:[#allocation7 + $0x20] sm:$0xff]   ;;  %v871_v13 = vld [vmem:[#allocation5 + $0x38] sm:$0xff]   ;;  %v877_v15 = vld [vmem:[#allocation7 + $0x28] sm:$0xff]   ;;  %p967_p8 = scmp.ne.s32.totalorder %s1308_s11, %s966_s10  ;;  %p1375_p12 = scmp.ne.s32.totalorder %s1371_s8, 0 }
  0x71   : > { %v312_v14 = vld [vmem:[%s1283_s17] sm:$0xff]  ;;  %s1061_s25 = smov [#allocation8]  }
  0x72   : > { %v313_v16 = vpack.c.bf16 %v312_v14, %v312_v14  ;;  %v878_v17 = vld [vmem:[#allocation7 + $0x30] sm:$0xff]   ;;  %v879_v18 = vld [vmem:[#allocation7 + $0x38] sm:$0xff]   ;;  %p968_p1 = pnand %p967_p8, %p1375_p12  ;;  %s970_s16 = sshll.u32 %s1061_s25, 4  ;;  %s971_s16 = int_to_ptr.vmem [resolvable:$false] %s970_s16 }
  0x73   : > { %740 = vmatpush3.bf16.msra.mxu0 %v865_v2  ;;  %760 = vmatpush3.bf16.msra.mxu1 %v873_v6  ;;  %v697_v19 = vld [vmem:[%s1357_s2] ss:$0 sm:$0xff]  ;;  %s972_s17 = scalar_lea.vmem %s971_s16, 256  ;;  %p973_p3 = scmp.lt.s32.totalorder %s1308_s11, %s971_s16 }
  0x74   : > { %741 = vmatprep.subr.bf16.mxu0 %v1059_v0  ;;  %761 = vmatprep.subr.bf16.mxu1 %v1059_v0  ;;  %v714_v27 = vld [vmem:[%s1359_s4] ss:$0 sm:$0xff]  ;;  %p969_p10 = pneg %p968_p1  ;;  %p974_p5 = scmp.lt.s32.totalorder %s972_s17, %s966_s10 }
  0x76   : > { %p975_p9 = por %p974_p5, %p973_p3 }
  0x77   : > { %742 = vmatpush3.bf16.msra.mxu0 %v866_v3  ;;  %762 = vmatpush3.bf16.msra.mxu1 %v874_v8 }
  0x78   : > { %743 = vmatprep.subr.bf16.mxu0 %v1059_v0  ;;  %763 = vmatprep.subr.bf16.mxu1 %v1059_v0  ;;  %p976_p11 = pnand %p975_p9, %p969_p10 }
  0x7b   : > { %744 = vmatpush3.bf16.msra.mxu0 %v867_v5  ;;  %764 = vmatpush3.bf16.msra.mxu1 %v875_v10 }
  0x7c   : > { %745 = vmatprep.subr.bf16.mxu0 %v1059_v0  ;;  %765 = vmatprep.subr.bf16.mxu1 %v1059_v0 }
  0x7f   : > { %746 = vmatpush3.bf16.msra.mxu0 %v868_v7  ;;  %766 = vmatpush3.bf16.msra.mxu1 %v876_v12 }
  0x80   : > { %747 = vmatprep.subr.bf16.mxu0 %v1059_v0  ;;  %767 = vmatprep.subr.bf16.mxu1 %v1059_v0 }
  0x83   : > { %748 = vmatpush3.bf16.msra.mxu0 %v869_v9  ;;  %768 = vmatpush3.bf16.msra.mxu1 %v877_v15 }
  0x84   : > { %749 = vmatprep.subr.bf16.mxu0 %v1059_v0  ;;  %769 = vmatprep.subr.bf16.mxu1 %v1059_v0 }
  0x87   : > { %750 = vmatpush3.bf16.msra.mxu0 %v870_v11  ;;  %770 = vmatpush3.bf16.msra.mxu1 %v878_v17 }
  0x88   : > { %751 = vmatprep.subr.bf16.mxu0 %v1059_v0  ;;  %771 = vmatprep.subr.bf16.mxu1 %v1059_v0 }
  0x8b   : > { %752 = vmatpush3.bf16.msra.mxu0 %v871_v13  ;;  %772 = vmatpush3.bf16.msra.mxu1 %v879_v18 }
  0x8e   : > { %754 = vmatmul.mubr.bf16.vlgmr.msra.gmra.mrb[0].mxu0 %v313_v16 }
 0x161   : > { %v419_v20 = vpop.f32.mrb[0].mxu0 }
 0x162   : > { %v420_v21 = vadd.f32 %v697_v19, %v419_v20  ;;  %v755_v22 = vpop.f32.mrb[1].mxu0 }
 0x163   : > { %v422_v23 = vpop.f32.mrb[2].mxu0 }
 0x164   : > { %v425_v24 = vmax.f32 %v420_v21, 0.0  ;;  %v756_v25 = vpop.f32.mrb[3].mxu0 }
 0x166   : > { %v426_v26 = vpack.c.bf16 %v425_v24, %v425_v24 }
 0x168   : > { %774 = vmatmul.mubr.bf16.vlgmr.msra.gmra.mrb[0].mxu1 %v426_v26 }
 0x23b   : > { %v525_v28 = vpop.f32.mrb[0].mxu1 }
 0x23c   : > { %v554_v29 = vadd.f32 %v714_v27, %v525_v28  ;;  %v775_v30 = vpop.f32.mrb[1].mxu1 }
 0x23d   : > { %v528_v31 = vpop.f32.mrb[2].mxu1 }
 0x23e   : > { %555 = vst [vmem:[%s306_s9] sm:$0xff] %v554_v29  ;;  %v776_v32 = vpop.f32.mrb[3].mxu1 }
 0x23f   : > { %979 = shalt.err (!%p976_p11)
}
 0x240   : > { %s980_s13 = scalar_lea.hbm %s1306_s14, 128  ;;  %s984_s30 = scalar_lea.hbm %s1360_s5, 256 }
 0x241   : > { %p981_p0 = scmp.ne.s32.totalorder %s1306_s14, %s980_s13  ;;  %p985_p6 = scmp.lt.u32.totalorder %s1306_s14, %s1360_s5 }
 0x242   : > { %p986_p7 = scmp.lt.u32.totalorder %s984_s30, %s980_s13  ;;  %p988_p8 = scmp.lt.u32.totalorder %s980_s13, %s1306_s14 }
 0x243   : > { %p982_p4 = pnand %p981_p0, %p1375_p12 }
 0x244   : > { %p987_p2 = por %p986_p7, %p985_p6 }
 0x245   : > { %p983_p13 = pneg %p982_p4 }
 0x246   : > { %p989_p1 = por %p988_p8, %p987_p2 }
 0x248   : > { %p990_p10 = pnand %p989_p1, %p983_p13 }
 0x24a   : > { %993 = shalt.err (!%p990_p10)
}
 0x24b   : > { %787 = dma.vmem_to_hbm [thread:$0]  (%p1375_p12), %s1308_s11, 128, %s1306_s14, %s557_s21  }
 0x24c PF: > { %s582_s9 = sand.u32 1, %s1032_s18   ;;  %p1376_p3 = scmp.ne.s32.totalorder %s1368_s29, 0 }
 0x24d   : > { %p1377_p5 = scmp.ge.s32.totalorder %s1052_s23, 2  ;;  %s583_s15 = scalar_lea.sflag [#allocation4], %s582_s9 }
 0x24f   : > { %p801_p9 = pnand %p1377_p5, %p1376_p3 }
 0x251   : > { %1027 = dma.done.wait (!%p801_p9), %s583_s15, 128  }
 0x252   : > { %1029 = vsyncadd (!%p801_p9), %s583_s15, 4294967168  ;;  %s22_s23 = sadd.s32 1, %s1052_s23   ;;  %s1378_s18 = smov %s1036_s19 }
 0x253   : > { %p19_p11 = scmp.ge.s32.totalorder %s22_s23, 4   ;;  %s1379_s19 = smov %s1040_s20 }
 0x254   : > { %s1380_s20 = smov %s1234_s6  ;;  %s1381_s21 = smov %s1048_s22 }
 0x255   : > { %s1382_s22 = smov %s1384_s12  ;;  %21 = sbr.rel (!%p19_p11) target bundleno = 7 (0x7), region = 110 }
 0x25c   :  { %588 = vsyncpa [#allocation3], 1 }
 0x25d   :  { %590 = vsyncpa [#allocation3 + $0x1], 1 }
 0x25e   :  { %591 = vsyncpa [#allocation6], 1 }
 0x25f   :  { %592 = vsyncpa [#allocation4], 1 }
 0x260   :  { %594 = vsyncpa [#allocation4 + $0x1], 1 }

// kernel: tpu_custom_call.1
= control target key start
LH: loop header
LB: loop body
LE: loop exit
PB: predicated region body
PF: predicated region fallthrough
CT: control target
= control target key end

     0   :  { %10 = vsyncpa [#allocation3], 0  ;;  %s1355_s0 = inlined_call_operand.hbm [shape: f32[16,128], index: 0, kind: input, shape index: {}]   ;;  %s1356_s1 = inlined_call_operand.hbm [shape: bf16[128,128], index: 1, kind: input, shape index: {}]   ;;  %s1357_s2 = inlined_call_operand.vmem [shape: f32[1,128], index: 2, kind: input, shape index: {}]   ;;  %s1358_s3 = inlined_call_operand.hbm [shape: bf16[128,128], index: 3, kind: input, shape index: {}]   ;;  %s1359_s4 = inlined_call_operand.vmem [shape: f32[1,128], index: 4, kind: input, shape index: {}]   ;;  %s1360_s5 = inlined_call_operand.hbm [shape: f32[16,128], index: 5, kind: output, shape index: {}]  }
   0x1   :  { %12 = vsyncpa [#allocation3 + $0x1], 0 }
   0x2   :  { %13 = vsyncpa [#allocation6], 0 }
   0x3   :  { %14 = vsyncpa [#allocation4], 0 }
   0x4   :  { %16 = vsyncpa [#allocation4 + $0x1], 0  ;;  %s1092_s18 = smov 0   ;;  %s1094_s19 = smov 0  }
   0x5   :  { %s1096_s20 = smov 0   ;;  %s1098_s21 = smov 0  }
   0x6   :  { %s1100_s22 = smov 0   ;;  %s1102_s23 = smov 0  }
   0x7 LB: > { %s683_s24 = sadd.s32 4294967295, %s1052_s23   ;;  %s684_s25 = sadd.s32 4294967294, %s1052_s23   ;;  %s1052_s23 = sphi %s1102_s23, %s22_s23   ;;  %s1048_s22 = sphi %s1100_s22, %s1382_s22   ;;  %s1044_s21 = sphi %s1098_s21, %s1381_s21   ;;  %s1040_s20 = sphi %s1096_s20, %s1380_s20   ;;  %s1036_s19 = sphi %s1094_s19, %s1379_s19   ;;  %s1032_s18 = sphi %s1092_s18, %s1378_s18  }
   0x8   : > { %p54_p0 = scmp.ne.s32.totalorder %s1036_s19, %s1032_s18  ;;  %p1126_p1 = scmp.eq.s32.totalorder %s683_s24, 0 }
   0x9   : > { %p1130_p2 = scmp.eq.s32.totalorder %s683_s24, 1  ;;  %p183_p3 = scmp.eq.s32.totalorder %s684_s25, 1 }
   0xa   : > { %s1365_s26 = scalar_select %p1126_p1, 1, 0 }
   0xb   : > { %p1136_p4 = por %p1126_p1, %p54_p0  ;;  %p685_p5 = scmp.ge.s32.totalorder %s1052_s23, 1 }
   0xc   : > { %p1141_p6 = por %p183_p3, %p54_p0  ;;  %p190_p7 = scmp.lt.s32.totalorder %s1052_s23, 3 }
   0xd   : > { %s1367_s28 = scalar_select %p1136_p4, 1, 0 }
   0xe   : > { %s1368_s29 = scalar_select %p1141_p6, 1, 0 }
   0xf   : > { %p1146_p8 = pnand %p685_p5, %p190_p7  ;;  %s1054_s6 = smov [#allocation5]  }
  0x10   : > { %s204_s7 = sshll.u32 %s1054_s6, 4  ;;  %s1055_s9 = smov [#allocation7]   ;;  %s1150_s7 = int_to_ptr.vmem [resolvable:$true] %s204_s7 }
  0x11   : > { %p789_p9 = pneg %p1146_p8  ;;  %s226_s10 = sshll.u32 %s1055_s9, 4  ;;  %s1161_s10 = int_to_ptr.vmem [resolvable:$true] %s226_s10 }
  0x12   : > { %s880_s13 = scalar_lea.hbm %s1356_s1, 1024 }
  0x13   : > { %p1157_p11 = pnand %p789_p9, %p1126_p1  ;;  %p881_p12 = scmp.ne.s32.totalorder %s1356_s1, %s880_s13 }
  0x14   : > { %p887_p5 = scmp.lt.u32.totalorder %s880_s13, %s1356_s1 }
  0x15   : > { %p882_p13 = pneg %p1157_p11 }
  0x17   : > { %p883_p0 = pnand %p882_p13, %p881_p12 }
  0x19   : > { %p884_p3 = pneg %p883_p0 }
  0x1b   : > { %p889_p7 = pnand %p887_p5, %p884_p3 }
  0x1d   : > { %892 = shalt.err (!%p889_p7)
}
  0x1e   : > { %s893_s24 = scalar_lea.vmem %s1150_s7, 1024  ;;  %p901_p1 = scmp.lt.s32.totalorder %s1150_s7, %s1150_s7 }
  0x1f   : > { %p894_p9 = scmp.ne.s32.totalorder %s1150_s7, %s893_s24  ;;  %p902_p12 = scmp.lt.s32.totalorder %s893_s24, %s893_s24 }
  0x21   : > { %p896_p10 = pnand %p894_p9, %p882_p13  ;;  %p903_p0 = por %p902_p12, %p901_p1 }
  0x23   : > { %p897_p6 = pneg %p896_p10 }
  0x25   : > { %p904_p4 = pnand %p903_p0, %p897_p6 }
  0x27   : > { %907 = shalt.err (!%p904_p4)
}
  0x28   : > { %s1056_s25 = smov 64   ;;  %s1057_s6 = smov 4  }
  0x29   : > { %792 = dma.hbm_to_vmem [thread:$0]  (!%p1157_p11), %s1356_s1, 1024, %s1150_s7, [#allocation6], %s1056_s25, %s1056_s25, %s1057_s6  }
  0x2a   : > { %s908_s14 = scalar_lea.hbm %s1358_s3, 1024 }
  0x2b   : > { %p909_p1 = scmp.ne.s32.totalorder %s1358_s3, %s908_s14  ;;  %p915_p10 = scmp.lt.u32.totalorder %s908_s14, %s1358_s3 }
  0x2d   : > { %p911_p4 = pnand %p909_p1, %p882_p13 }
  0x2f   : > { %p912_p6 = pneg %p911_p4 }
  0x31   : > { %p917_p3 = pnand %p915_p10, %p912_p6 }
  0x33   : > { %920 = shalt.err (!%p917_p3)
}
  0x34   : > { %s921_s7 = scalar_lea.vmem %s1161_s10, 1024  ;;  %p929_p12 = scmp.lt.s32.totalorder %s1161_s10, %s1161_s10 }
  0x35   : > { %p922_p5 = scmp.ne.s32.totalorder %s1161_s10, %s921_s7  ;;  %p930_p0 = scmp.lt.s32.totalorder %s921_s7, %s921_s7 }
  0x37   : > { %p924_p7 = pnand %p922_p5, %p882_p13  ;;  %p931_p1 = por %p930_p0, %p929_p12 }
  0x39   : > { %p925_p9 = pneg %p924_p7 }
  0x3b   : > { %p932_p4 = pnand %p931_p1, %p925_p9 }
  0x3d   : > { %935 = shalt.err (!%p932_p4)
}
  0x3e   : > { %795 = dma.hbm_to_vmem [thread:$0]  (!%p1157_p11), %s1358_s3, 1024, %s1161_s10, [#allocation6], %s1056_s25, %s1056_s25, %s1057_s6  }
  0x3f   : > { %s34_s12 = sadd.s32 1, %s1048_s22  ;;  %s41_s13 = sadd.s32 1, %s1040_s20 }
  0x40   : > { %p36_p13 = scmp.ge.s32.totalorder %s34_s12, 2  ;;  %p48_p6 = scmp.ne.s32.totalorder %s1040_s20, %s1036_s19 }
  0x41   : > { %p49_p10 = scmp.eq.s32.totalorder %s1052_s23, 0  ;;  %p806_p3 = scmp.lt.s32.totalorder %s1052_s23, 2 }
  0x42   : > { %s1384_s12 = smov (%p36_p13, %s34_s12), 0  ;;  %p1225_p7 = por %p1130_p2, %p48_p6 }
  0x43   : > { %p50_p5 = por %p49_p10, %p48_p6  ;;  %s38_s14 = ssub.s32 %s1048_s22, %s1384_s12 }
  0x44   : > { %s1371_s8 = scalar_select %p1225_p7, 1, 0 }
  0x45   : > { %s243_s15 = sand.u32 1, %s1040_s20   ;;  %p39_p9 = scmp.eq.s32.totalorder %s38_s14, 0 }
  0x46   : > { %s690_s10 = sshll.u32 %s243_s15, 3  ;;  %s691_s25 = sshll.u32 %s1048_s22, 7 }
  0x47   : > { %s1234_s6 = scalar_select %p39_p9, %s1040_s20, %s41_s13  }
  0x48   : > { %s1239_s24 = scalar_lea.hbm %s1355_s0, %s691_s25  ;;  %s247_s27 = scalar_lea.vmem [#allocation2], %s690_s10 }
  0x49   : > { %s254_s7 = sshll.u32 %s247_s27, 4  ;;  %p1243_p2 = pnand %p806_p3, %p50_p5  ;;  %s1247_s7 = int_to_ptr.vmem [resolvable:$true] %s254_s7 }
  0x4a   : > { %s244_s11 = scalar_lea.sflag [#allocation3], %s243_s15  ;;  %s936_s13 = scalar_lea.hbm %s1239_s24, 128 }
  0x4b   : > { %p937_p11 = scmp.ne.s32.totalorder %s1239_s24, %s936_s13  ;;  %p938_p12 = pneg %p1243_p2 }
  0x4c   : > { %s941_s25 = scalar_lea.hbm %s1355_s0, 256  ;;  %p942_p4 = scmp.lt.u32.totalorder %s1239_s24, %s1355_s0 }
  0x4d   : > { %p939_p0 = pnand %p938_p12, %p937_p11  ;;  %p943_p13 = scmp.lt.u32.totalorder %s941_s25, %s936_s13 }
  0x4e   : > { %p945_p10 = scmp.lt.u32.totalorder %s936_s13, %s1239_s24 }
  0x4f   : > { %p940_p1 = pneg %p939_p0  ;;  %p944_p6 = por %p943_p13, %p942_p4 }
  0x51   : > { %p946_p3 = por %p945_p10, %p944_p6 }
  0x53   : > { %p947_p5 = pnand %p946_p3, %p940_p1 }
  0x55   : > { %950 = shalt.err (!%p947_p5)
}
  0x56   : > { %s951_s15 = scalar_lea.vmem %s1247_s7, 128  ;;  %s1058_s27 = smov [#allocation2]  }
  0x57   : > { %p952_p9 = scmp.ne.s32.totalorder %s1247_s7, %s951_s15  ;;  %s956_s14 = sshll.u32 %s1058_s27, 4  ;;  %s957_s14 = int_to_ptr.vmem [resolvable:$false] %s956_s14 }
  0x58   : > { %s958_s10 = scalar_lea.vmem %s957_s14, 256  ;;  %p959_p7 = scmp.lt.s32.totalorder %s1247_s7, %s957_s14 }
  0x59   : > { %p954_p11 = pnand %p952_p9, %p938_p12  ;;  %p960_p4 = scmp.lt.s32.totalorder %s958_s10, %s951_s15 }
  0x5b   : > { %p955_p0 = pneg %p954_p11  ;;  %p961_p13 = por %p960_p4, %p959_p7 }
  0x5d   : > { %p962_p6 = pnand %p961_p13, %p955_p0 }
  0x5f   : > { %965 = shalt.err (!%p962_p6)
}
  0x60   : > { %799 = dma.hbm_to_vmem [thread:$0]  (!%p1243_p2), %s1239_s24, 128, %s1247_s7, %s244_s11  }
  0x61   : > { %263 = sbr.rel (%p1146_p8) target bundleno = 588 (0x24c), region = 40  ;;  %s1277_s13 = sand.u32 (!%p1146_p8), 1, %s1036_s19  }
  0x62   : > { %s693_s25 = sshll.u32 (!%p1146_p8), %s1277_s13, 3  ;;  %s266_s16 = scalar_lea.sflag (!%p1146_p8), [#allocation3], %s1277_s13 }
  0x63   : > { %s1283_s17 = scalar_lea.vmem (!%p1146_p8), [#allocation2], %s693_s25  ;;  %p1373_p7 = scmp.ne.s32.totalorder (!%p1146_p8), %s1367_s28, 0 }
  0x68   : > { %1019 = dma.done.wait (%p1373_p7), %s266_s16, 128  }
  0x69   : > { %1021 = vsyncadd (%p1373_p7), %s266_s16, 4294967168  ;;  %p1374_p2 = scmp.ne.s32.totalorder %s1365_s26, 0 }
  0x6b   : > { %1023 = dma.done.wait (%p1374_p2), [#allocation6], 2048  }
  0x6c   : > { %1025 = vsyncadd (%p1374_p2), [#allocation6], 4294965248  ;;  %v1059_v0 = vmov 0.0   ;;  %vm1060_vm0 = vmmov 0   ;;  %v864_v1 = vld [vmem:[#allocation5] sm:$0xff]   ;;  %v865_v2 = vld [vmem:[#allocation5 + $0x8] sm:$0xff]  }
  0x6d   : > { %737 = vmatprep.subr.bf16.mxu0 %v1059_v0  ;;  %753 = vmatprep.mubr.msk.bf16.mxu0 %vm1060_vm0, %v1059_v0  ;;  %v866_v3 = vld [vmem:[#allocation5 + $0x10] sm:$0xff]   ;;  %v872_v4 = vld [vmem:[#allocation7] sm:$0xff]   ;;  %v867_v5 = vld [vmem:[#allocation5 + $0x18] sm:$0xff]   ;;  %s716_s7 = sshll.u32 %s1044_s21, 7  ;;  %s306_s9 = scalar_lea.vmem [#allocation8], %s693_s25 }
  0x6e   : > { %757 = vmatprep.subr.bf16.mxu1 %v1059_v0  ;;  %773 = vmatprep.mubr.msk.bf16.mxu1 %vm1060_vm0, %v1059_v0  ;;  %v873_v6 = vld [vmem:[#allocation7 + $0x8] sm:$0xff]   ;;  %v868_v7 = vld [vmem:[#allocation5 + $0x20] sm:$0xff]   ;;  %v874_v8 = vld [vmem:[#allocation7 + $0x10] sm:$0xff]   ;;  %s570_s11 = sshll.u32 %s306_s9, 4  ;;  %s1306_s14 = scalar_lea.hbm %s1360_s5, %s716_s7  ;;  %s1308_s11 = int_to_ptr.vmem [resolvable:$true] %s570_s11 }
  0x6f   : > { %738 = vmatpush3.bf16.msra.mxu0 %v864_v1  ;;  %758 = vmatpush3.bf16.msra.mxu1 %v872_v4  ;;  %v869_v9 = vld [vmem:[#allocation5 + $0x28] sm:$0xff]   ;;  %v875_v10 = vld [vmem:[#allocation7 + $0x18] sm:$0xff]   ;;  %v870_v11 = vld [vmem:[#allocation5 + $0x30] sm:$0xff]   ;;  %s557_s21 = scalar_lea.sflag [#allocation4], %s1277_s13  ;;  %s966_s10 = scalar_lea.vmem %s1308_s11, 128 }
  0x70   : > { %739 = vmatprep.subr.bf16.mxu0 %v1059_v0  ;;  %759 = vmatprep.subr.bf16.mxu1 %v1059_v0  ;;  %v876_v12 = vld [vmem:[#allocation7 + $0x20] sm:$0xff]   ;;  %v871_v13 = vld [vmem:[#allocation5 + $0x38] sm:$0xff]   ;;  %v877_v15 = vld [vmem:[#allocation7 + $0x28] sm:$0xff]   ;;  %p967_p8 = scmp.ne.s32.totalorder %s1308_s11, %s966_s10  ;;  %p1375_p12 = scmp.ne.s32.totalorder %s1371_s8, 0 }
  0x71   : > { %v312_v14 = vld [vmem:[%s1283_s17] sm:$0xff]  ;;  %s1061_s25 = smov [#allocation8]  }
  0x72   : > { %v313_v16 = vpack.c.bf16 %v312_v14, %v312_v14  ;;  %v878_v17 = vld [vmem:[#allocation7 + $0x30] sm:$0xff]   ;;  %v879_v18 = vld [vmem:[#allocation7 + $0x38] sm:$0xff]   ;;  %p968_p1 = pnand %p967_p8, %p1375_p12  ;;  %s970_s16 = sshll.u32 %s1061_s25, 4  ;;  %s971_s16 = int_to_ptr.vmem [resolvable:$false] %s970_s16 }
  0x73   : > { %740 = vmatpush3.bf16.msra.mxu0 %v865_v2  ;;  %760 = vmatpush3.bf16.msra.mxu1 %v873_v6  ;;  %v697_v19 = vld [vmem:[%s1357_s2] ss:$0 sm:$0xff]  ;;  %s972_s17 = scalar_lea.vmem %s971_s16, 256  ;;  %p973_p3 = scmp.lt.s32.totalorder %s1308_s11, %s971_s16 }
  0x74   : > { %741 = vmatprep.subr.bf16.mxu0 %v1059_v0  ;;  %761 = vmatprep.subr.bf16.mxu1 %v1059_v0  ;;  %v714_v27 = vld [vmem:[%s1359_s4] ss:$0 sm:$0xff]  ;;  %p969_p10 = pneg %p968_p1  ;;  %p974_p5 = scmp.lt.s32.totalorder %s972_s17, %s966_s10 }
  0x76   : > { %p975_p9 = por %p974_p5, %p973_p3 }
  0x77   : > { %742 = vmatpush3.bf16.msra.mxu0 %v866_v3  ;;  %762 = vmatpush3.bf16.msra.mxu1 %v874_v8 }
  0x78   : > { %743 = vmatprep.subr.bf16.mxu0 %v1059_v0  ;;  %763 = vmatprep.subr.bf16.mxu1 %v1059_v0  ;;  %p976_p11 = pnand %p975_p9, %p969_p10 }
  0x7b   : > { %744 = vmatpush3.bf16.msra.mxu0 %v867_v5  ;;  %764 = vmatpush3.bf16.msra.mxu1 %v875_v10 }
  0x7c   : > { %745 = vmatprep.subr.bf16.mxu0 %v1059_v0  ;;  %765 = vmatprep.subr.bf16.mxu1 %v1059_v0 }
  0x7f   : > { %746 = vmatpush3.bf16.msra.mxu0 %v868_v7  ;;  %766 = vmatpush3.bf16.msra.mxu1 %v876_v12 }
  0x80   : > { %747 = vmatprep.subr.bf16.mxu0 %v1059_v0  ;;  %767 = vmatprep.subr.bf16.mxu1 %v1059_v0 }
  0x83   : > { %748 = vmatpush3.bf16.msra.mxu0 %v869_v9  ;;  %768 = vmatpush3.bf16.msra.mxu1 %v877_v15 }
  0x84   : > { %749 = vmatprep.subr.bf16.mxu0 %v1059_v0  ;;  %769 = vmatprep.subr.bf16.mxu1 %v1059_v0 }
  0x87   : > { %750 = vmatpush3.bf16.msra.mxu0 %v870_v11  ;;  %770 = vmatpush3.bf16.msra.mxu1 %v878_v17 }
  0x88   : > { %751 = vmatprep.subr.bf16.mxu0 %v1059_v0  ;;  %771 = vmatprep.subr.bf16.mxu1 %v1059_v0 }
  0x8b   : > { %752 = vmatpush3.bf16.msra.mxu0 %v871_v13  ;;  %772 = vmatpush3.bf16.msra.mxu1 %v879_v18 }
  0x8e   : > { %754 = vmatmul.mubr.bf16.vlgmr.msra.gmra.mrb[0].mxu0 %v313_v16 }
 0x161   : > { %v419_v20 = vpop.f32.mrb[0].mxu0 }
 0x162   : > { %v420_v21 = vadd.f32 %v697_v19, %v419_v20  ;;  %v755_v22 = vpop.f32.mrb[1].mxu0 }
 0x163   : > { %v422_v23 = vpop.f32.mrb[2].mxu0 }
 0x164   : > { %v425_v24 = vmax.f32 %v420_v21, 0.0  ;;  %v756_v25 = vpop.f32.mrb[3].mxu0 }
 0x166   : > { %v426_v26 = vpack.c.bf16 %v425_v24, %v425_v24 }
 0x168   : > { %774 = vmatmul.mubr.bf16.vlgmr.msra.gmra.mrb[0].mxu1 %v426_v26 }
 0x23b   : > { %v525_v28 = vpop.f32.mrb[0].mxu1 }
 0x23c   : > { %v554_v29 = vadd.f32 %v714_v27, %v525_v28  ;;  %v775_v30 = vpop.f32.mrb[1].mxu1 }
 0x23d   : > { %v528_v31 = vpop.f32.mrb[2].mxu1 }
 0x23e   : > { %555 = vst [vmem:[%s306_s9] sm:$0xff] %v554_v29  ;;  %v776_v32 = vpop.f32.mrb[3].mxu1 }
 0x23f   : > { %979 = shalt.err (!%p976_p11)
}
 0x240   : > { %s980_s13 = scalar_lea.hbm %s1306_s14, 128  ;;  %s984_s30 = scalar_lea.hbm %s1360_s5, 256 }
 0x241   : > { %p981_p0 = scmp.ne.s32.totalorder %s1306_s14, %s980_s13  ;;  %p985_p6 = scmp.lt.u32.totalorder %s1306_s14, %s1360_s5 }
 0x242   : > { %p986_p7 = scmp.lt.u32.totalorder %s984_s30, %s980_s13  ;;  %p988_p8 = scmp.lt.u32.totalorder %s980_s13, %s1306_s14 }
 0x243   : > { %p982_p4 = pnand %p981_p0, %p1375_p12 }
 0x244   : > { %p987_p2 = por %p986_p7, %p985_p6 }
 0x245   : > { %p983_p13 = pneg %p982_p4 }
 0x246   : > { %p989_p1 = por %p988_p8, %p987_p2 }
 0x248   : > { %p990_p10 = pnand %p989_p1, %p983_p13 }
 0x24a   : > { %993 = shalt.err (!%p990_p10)
}
 0x24b   : > { %787 = dma.vmem_to_hbm [thread:$0]  (%p1375_p12), %s1308_s11, 128, %s1306_s14, %s557_s21  }
 0x24c PF: > { %s582_s9 = sand.u32 1, %s1032_s18   ;;  %p1376_p3 = scmp.ne.s32.totalorder %s1368_s29, 0 }
 0x24d   : > { %p1377_p5 = scmp.ge.s32.totalorder %s1052_s23, 2  ;;  %s583_s15 = scalar_lea.sflag [#allocation4], %s582_s9 }
 0x24f   : > { %p801_p9 = pnand %p1377_p5, %p1376_p3 }
 0x251   : > { %1027 = dma.done.wait (!%p801_p9), %s583_s15, 128  }
 0x252   : > { %1029 = vsyncadd (!%p801_p9), %s583_s15, 4294967168  ;;  %s22_s23 = sadd.s32 1, %s1052_s23   ;;  %s1378_s18 = smov %s1036_s19 }
 0x253   : > { %p19_p11 = scmp.ge.s32.totalorder %s22_s23, 4   ;;  %s1379_s19 = smov %s1040_s20 }
 0x254   : > { %s1380_s20 = smov %s1234_s6  ;;  %s1381_s21 = smov %s1048_s22 }
 0x255   : > { %s1382_s22 = smov %s1384_s12  ;;  %21 = sbr.rel (!%p19_p11) target bundleno = 7 (0x7), region = 110 }
 0x25c   :  { %588 = vsyncpa [#allocation3], 1 }
 0x25d   :  { %590 = vsyncpa [#allocation3 + $0x1], 1 }
 0x25e   :  { %591 = vsyncpa [#allocation6], 1 }
 0x25f   :  { %592 = vsyncpa [#allocation4], 1 }
 0x260   :  { %594 = vsyncpa [#allocation4 + $0x1], 1 }

</bundles_post_ra>
